<compile_context>
chip_gen: v6e
topology: v6e:2x2x1
jax: 0.10.0
libtpu: 0.0.40
codegen_flags: <defaults>
</compile_context>

<pallas_src>
import functools

import jax
import jax.numpy as jnp
from jax import lax
from jax.experimental import pallas as pl
from jax.experimental.pallas import tpu as pltpu


# --------------------------------------------------------------------------
# Kernel
# --------------------------------------------------------------------------
def _domain_clf_loss_kernel(a_out_ref, a_tgt_ref, d_out_ref, d_tgt_ref,
                            sums_ref, acc_mse_ref, acc_bce_ref, *,
                            act_tile, dom_tile, act_blocks, dom_blocks,
                            blocks_per_split, n_action_valid, n_domain_valid):
    c = pl.program_id(0)          # split (outer, "parallel" / CORE_PARALLEL)
    i = pl.program_id(1)          # block within split (inner, "arbitrary")
    blk = c * blocks_per_split + i

    # Zero the per-lane partial accumulators at the start of every split.
    @pl.when(i == 0)
    def _():
        acc_mse_ref[...] = jnp.zeros_like(acc_mse_ref)
        acc_bce_ref[...] = jnp.zeros_like(acc_bce_ref)

    # ---- MSE partial sums: only when this grid step maps to a live action
    #      block (dead / clamped tiles are skipped entirely). ----
    @pl.when(blk < act_blocks)
    def _():
        ao = a_out_ref[...].astype(jnp.float32)
        at = a_tgt_ref[...].astype(jnp.float32)
        diff = ao - at
        sq = diff * diff

        def _accumulate(vals):
            # (act_tile, 128) -> (act_tile//8, 8, 128) is layout-free; the
            # axis-0 sum is pure VPU vreg adds into the (8, 128) accumulator.
            acc_mse_ref[...] += vals.reshape(act_tile // 8, 8, 128).sum(axis=0)

        @pl.when(blk == act_blocks - 1)        # only block that may hold padding
        def _():
            rem = n_action_valid - blk * (act_tile * 128)   # int32 scalar
            row = lax.broadcasted_iota(jnp.int32, (act_tile, 128), 0)
            col = lax.broadcasted_iota(jnp.int32, (act_tile, 128), 1)
            _accumulate(jnp.where(row * 128 + col < rem, sq, 0.0))

        @pl.when(blk < act_blocks - 1)         # interior blocks: no iota/mask
        def _():
            _accumulate(sq)

    # ---- BCE-with-logits partial sums, numerically-stable form:
    #      max(x, 0) - x*y + log1p(exp(-|x|)); gated on live domain blocks. ----
    @pl.when(blk < dom_blocks)
    def _():
        x = d_out_ref[...].astype(jnp.float32)
        y = d_tgt_ref[...].astype(jnp.float32)
        bce = jnp.maximum(x, 0.0) - x * y + jnp.log1p(jnp.exp(-jnp.abs(x)))

        def _accumulate(vals):
            acc_bce_ref[...] += vals.reshape(dom_tile // 8, 8, 128).sum(axis=0)

        @pl.when(blk == dom_blocks - 1)
        def _():
            rem = n_domain_valid - blk * (dom_tile * 128)
            row = lax.broadcasted_iota(jnp.int32, (dom_tile, 128), 0)
            col = lax.broadcasted_iota(jnp.int32, (dom_tile, 128), 1)
            _accumulate(jnp.where(row * 128 + col < rem, bce, 0.0))

        @pl.when(blk < dom_blocks - 1)
        def _():
            _accumulate(bce)

    # Final cross-lane/sublane reduce + SMEM scalar write, once per split.
    @pl.when(i == pl.num_programs(1) - 1)
    def _():
        sums_ref[0, 0] = jnp.sum(acc_mse_ref[...])
        sums_ref[0, 1] = jnp.sum(acc_bce_ref[...])


# --------------------------------------------------------------------------
# Wrapper helpers
# --------------------------------------------------------------------------
def _row_align(*dtypes):
    """Sublane alignment (rows) for the input dtypes (f32->8, bf16->16, i8->32)."""
    return max(8, *(32 // max(1, jnp.dtype(d).itemsize) for d in dtypes))


def _round_up(a, b):
    return -(-a // b) * b


def _to_lane_rows(x, row_align):
    """Flatten x into a lane-dense (rows, 128) slab with rows % row_align == 0.

    Free (pure reshape) when x.size is already a multiple of row_align*128;
    otherwise pads only up to the next such multiple (tiny).  Padded elements
    are masked inside the kernel via the true element count.
    """
    flat = x.reshape(-1)
    chunk = row_align * 128
    n = flat.size
    padded = _round_up(n, chunk)
    if padded != n:
        flat = jnp.pad(flat, (0, padded - n))
    return flat.reshape(padded // 128, 128)


def _jnp_fused_loss(action_output, action_target, domain_output, domain_target,
                    w_domain):
    """Fused pure-jnp path for tiny shapes (XLA fuses this into one kernel)."""
    ao = action_output.astype(jnp.float32)
    at = action_target.astype(jnp.float32)
    action_loss = jnp.mean(jnp.square(ao - at))
    x = domain_output.astype(jnp.float32)
    y = domain_target.astype(jnp.float32)
    bce = jnp.maximum(x, 0.0) - x * y + jnp.log1p(jnp.exp(-jnp.abs(x)))
    domain_loss = jnp.mean(bce)
    return action_loss + w_domain * domain_loss, action_loss, domain_loss


# --------------------------------------------------------------------------
# Public entry point
# --------------------------------------------------------------------------
def domain_clf_loss(action_output, action_target,
                    domain_output, domain_target, *,
                    w_domain, tile_rows=2048, num_splits=1,
                    split_semantics="parallel", use_kernel=None,
                    small_threshold=1 << 15):
    """Returns (total_loss, action_loss, domain_loss) as f32 scalars.

    On v7x pass num_splits=2 and split_semantics=pltpu.CORE_PARALLEL to shard
    the split axis across the two TensorCores; on v5e/v6e keep num_splits=1.
    """
    n_action = int(action_output.size)
    n_domain = int(domain_output.size)
    assert n_action > 0 and n_domain > 0
    assert int(action_target.size) == n_action
    assert int(domain_target.size) == n_domain

    # Tiny shapes (e.g. the production 2x8 / 2x1 case): the pallas_call launch
    # overhead dwarfs the math, so dispatch to the fused jnp expression.
    if use_kernel is None:
        use_kernel = (n_action + n_domain) >= small_threshold
    if not use_kernel:
        return _jnp_fused_loss(action_output, action_target,
                               domain_output, domain_target, w_domain)

    act_align = _row_align(action_output.dtype, action_target.dtype)
    dom_align = _row_align(domain_output.dtype, domain_target.dtype)

    a_out = _to_lane_rows(action_output, act_align)
    a_tgt = _to_lane_rows(action_target, act_align)
    d_out = _to_lane_rows(domain_output, dom_align)
    d_tgt = _to_lane_rows(domain_target, dom_align)

    act_rows = a_out.shape[0]
    dom_rows = d_out.shape[0]
    act_tile = min(_round_up(tile_rows, act_align), act_rows)
    dom_tile = min(_round_up(tile_rows, dom_align), dom_rows)

    act_blocks = pl.cdiv(act_rows, act_tile)
    dom_blocks = pl.cdiv(dom_rows, dom_tile)
    total_blocks = max(act_blocks, dom_blocks)
    blocks_per_split = pl.cdiv(total_blocks, num_splits)

    # Clamp the block index once a stream's blocks are exhausted: the resident
    # block is re-used (no re-DMA) and the pl.when gates skip its compute.
    def act_map(c, i):
        return (jnp.minimum(c * blocks_per_split + i, act_blocks - 1), 0)

    def dom_map(c, i):
        return (jnp.minimum(c * blocks_per_split + i, dom_blocks - 1), 0)

    kernel = functools.partial(
        _domain_clf_loss_kernel,
        act_tile=act_tile, dom_tile=dom_tile,
        act_blocks=act_blocks, dom_blocks=dom_blocks,
        blocks_per_split=blocks_per_split,
        n_action_valid=n_action, n_domain_valid=n_domain)

    cost = pl.CostEstimate(
        flops=4 * n_action + 8 * n_domain,
        transcendentals=2 * n_domain,
        bytes_accessed=(2 * n_action * action_output.dtype.itemsize
                        + 2 * n_domain * domain_output.dtype.itemsize
                        + 4 * 2 * num_splits))

    sums = pl.pallas_call(
        kernel,
        out_shape=jax.ShapeDtypeStruct((num_splits, 2), jnp.float32),
        grid_spec=pltpu.PrefetchScalarGridSpec(
            num_scalar_prefetch=0,
            grid=(num_splits, blocks_per_split),
            in_specs=[
                pl.BlockSpec((act_tile, 128), act_map),
                pl.BlockSpec((act_tile, 128), act_map),
                pl.BlockSpec((dom_tile, 128), dom_map),
                pl.BlockSpec((dom_tile, 128), dom_map),
            ],
            out_specs=pl.BlockSpec((1, 2), lambda c, i: (c, 0),
                                   memory_space=pltpu.SMEM),
            scratch_shapes=[pltpu.VMEM((8, 128), jnp.float32),
                            pltpu.VMEM((8, 128), jnp.float32)]),
        compiler_params=pltpu.CompilerParams(
            dimension_semantics=(split_semantics, "arbitrary")),
        cost_estimate=cost,
    )(a_out, a_tgt, d_out, d_tgt)

    # Finalize outside the kernel: divide by the TRUE element counts and apply
    # w_domain (kept out of the trace-baked kernel so sweeps don't recompile).
    action_loss = jnp.sum(sums[:, 0]) / n_action
    domain_loss = jnp.sum(sums[:, 1]) / n_domain
    total_loss = action_loss + w_domain * domain_loss
    return total_loss, action_loss, domain_loss


# --------------------------------------------------------------------------
# Reference + checks
# --------------------------------------------------------------------------
def _reference(action_output, action_target, domain_output, domain_target,
               w_domain):
    action_loss = jnp.mean((action_output - action_target) ** 2)
    x, y = domain_output, domain_target
    bce = jnp.maximum(x, 0.0) - x * y + jnp.log1p(jnp.exp(-jnp.abs(x)))
    domain_loss = jnp.mean(bce)
    return action_loss + w_domain * domain_loss, action_loss, domain_loss


def _check(action_output, action_target, domain_output, domain_target,
           w_domain, **kw):
    total, act, dom = domain_clf_loss(
        action_output, action_target, domain_output, domain_target,
        w_domain=w_domain, **kw)
    jax.block_until_ready((total, act, dom))
    ref_total, ref_act, ref_dom = _reference(
        action_output, action_target, domain_output, domain_target, w_domain)
    assert jnp.allclose(total, ref_total, atol=1e-5, rtol=1e-5), (total, ref_total)
    assert jnp.allclose(act, ref_act, atol=1e-5, rtol=1e-5), (act, ref_act)
    assert jnp.allclose(dom, ref_dom, atol=1e-5, rtol=1e-5), (dom, ref_dom)


if __name__ == "__main__":
    key = jax.random.PRNGKey(0)

    # --- Test 1: module-sized shapes (batch=2, action_dim=8, domain logit=1),
    #     forcing the kernel path.
    k1, k2, k3, k4 = jax.random.split(key, 4)
    B, A = 2, 8
    action_output = jax.random.normal(k1, (B, A), dtype=jnp.float32)
    action_target = jax.random.normal(k2, (B, A), dtype=jnp.float32)
    domain_output = jax.random.normal(k3, (B, 1), dtype=jnp.float32)
    domain_target = (jax.random.uniform(k4, (B, 1)) > 0.5).astype(jnp.float32)
    _check(action_output, action_target, domain_output, domain_target, 0.5,
           use_kernel=True)

    # --- Test 2: small shapes with a tiny tile to exercise the multi-block
    #     streaming reduction, live-block gating, clamping and both splits.
    k5, k6, k7, k8 = jax.random.split(jax.random.PRNGKey(1), 4)
    _check(jax.random.normal(k5, (64, 32), dtype=jnp.float32),
           jax.random.normal(k6, (64, 32), dtype=jnp.float32),
           jax.random.normal(k7, (64, 1), dtype=jnp.float32),
           (jax.random.uniform(k8, (64, 1)) > 0.5).astype(jnp.float32),
           0.25, use_kernel=True, tile_rows=8, num_splits=2)

    # --- Test 3: lane-unaligned element counts exercise the last-block
    #     tail-masking path for both streams.
    k9, k10, k11, k12 = jax.random.split(jax.random.PRNGKey(2), 4)
    _check(jax.random.normal(k9, (5, 77), dtype=jnp.float32),
           jax.random.normal(k10, (5, 77), dtype=jnp.float32),
           jax.random.normal(k11, (5, 1), dtype=jnp.float32),
           (jax.random.uniform(k12, (5, 1)) > 0.5).astype(jnp.float32),
           1.0, use_kernel=True, tile_rows=8)

    # --- Test 4: tiny-shape auto dispatch takes the fused pure-jnp path.
    _check(action_output, action_target, domain_output, domain_target, 0.5)

    print("KERNEL_OK")
</pallas_src>

<mosaic_0001>
module attributes {stable_mosaic.version = 11 : i64} {
  func.func @_domain_clf_loss_kernel(%arg0: i32, %arg1: i32, %arg2: memref<8x128xf32, #tpu.memory_space<vmem>>, %arg3: memref<8x128xf32, #tpu.memory_space<vmem>>, %arg4: memref<8x128xf32, #tpu.memory_space<vmem>>, %arg5: memref<8x128xf32, #tpu.memory_space<vmem>>, %arg6: memref<1x2xf32, #tpu.memory_space<smem>>, %arg7: memref<8x128xf32, #tpu.memory_space<vmem>>, %arg8: memref<8x128xf32, #tpu.memory_space<vmem>>) attributes {dimension_semantics = [#tpu.dimension_semantics<parallel>, #tpu.dimension_semantics<arbitrary>], iteration_bounds = array<i64: 1, 1>, scalar_prefetch = 0 : i64, scratch_operands = 2 : i64, tpu.core_type = #tpu.core_type<tc>, window_params = [{transform_indices = @transform_0, window_bounds = array<i64: 8, 128>}, {transform_indices = @transform_1, window_bounds = array<i64: 8, 128>}, {transform_indices = @transform_2, window_bounds = array<i64: 8, 128>}, {transform_indices = @transform_3, window_bounds = array<i64: 8, 128>}, {transform_indices = @transform_4, window_bounds = array<i64: 1, 2>}]} {
    %c1_i32 = arith.constant 1 : i32
    %0 = arith.muli %arg0, %c1_i32 : i32
    %1 = arith.addi %0, %arg1 : i32
    %c0_i32 = arith.constant 0 : i32
    %2 = arith.cmpi eq, %arg1, %c0_i32 : i32
    %3 = arith.extui %2 : i1 to i32
    %c0_i32_0 = arith.constant 0 : i32
    %4 = arith.cmpi ne, %3, %c0_i32_0 : i32
    scf.if %4 {
      %cst = arith.constant 0.000000e+00 : f32
      %14 = vector.broadcast %cst : f32 to vector<8x128xf32>
      %c0 = arith.constant 0 : index
      %c0_7 = arith.constant 0 : index
      %15 = vector.load %arg7[%c0, %c0_7] : memref<8x128xf32, #tpu.memory_space<vmem>>, vector<8x128xf32>
      tpu.vector_store %arg7[%c0, %c0_7], %14 {strides = array<i32>} : memref<8x128xf32, #tpu.memory_space<vmem>>, vector<8x128xf32>,
      %cst_8 = arith.constant 0.000000e+00 : f32
      %16 = vector.broadcast %cst_8 : f32 to vector<8x128xf32>
      %c0_9 = arith.constant 0 : index
      %c0_10 = arith.constant 0 : index
      %17 = vector.load %arg8[%c0_9, %c0_10] : memref<8x128xf32, #tpu.memory_space<vmem>>, vector<8x128xf32>
      tpu.vector_store %arg8[%c0_9, %c0_10], %16 {strides = array<i32>} : memref<8x128xf32, #tpu.memory_space<vmem>>, vector<8x128xf32>,
    } else {
    }
    %c1_i32_1 = arith.constant 1 : i32
    %5 = arith.cmpi slt, %1, %c1_i32_1 : i32
    %6 = arith.extui %5 : i1 to i32
    %c0_i32_2 = arith.constant 0 : i32
    %7 = arith.cmpi ne, %6, %c0_i32_2 : i32
    scf.if %7 {
      %c0 = arith.constant 0 : index
      %c0_7 = arith.constant 0 : index
      %14 = vector.load %arg2[%c0, %c0_7] : memref<8x128xf32, #tpu.memory_space<vmem>>, vector<8x128xf32>
      %c0_8 = arith.constant 0 : index
      %c0_9 = arith.constant 0 : index
      %15 = vector.load %arg3[%c0_8, %c0_9] : memref<8x128xf32, #tpu.memory_space<vmem>>, vector<8x128xf32>
      %16 = arith.subf %14, %15 : vector<8x128xf32>
      %17 = arith.mulf %16, %16 : vector<8x128xf32>
      %c0_i32_10 = arith.constant 0 : i32
      %18 = arith.cmpi eq, %1, %c0_i32_10 : i32
      %19 = arith.extui %18 : i1 to i32
      %c0_i32_11 = arith.constant 0 : i32
      %20 = arith.cmpi ne, %19, %c0_i32_11 : i32
      scf.if %20 {
        %c1024_i32 = arith.constant 1024 : i32
        %24 = arith.muli %1, %c1024_i32 : i32
        %c16_i32 = arith.constant 16 : i32
        %25 = arith.subi %c16_i32, %24 : i32
        %26 = tpu.iota {dimensions = array<i32: 0>} : vector<8x128xi32>
        %27 = tpu.iota {dimensions = array<i32: 1>} : vector<8x128xi32>
        %c128_i32 = arith.constant 128 : i32
        %28 = vector.broadcast %c128_i32 : i32 to vector<8x128xi32>
        %29 = arith.muli %26, %28 : vector<8x128xi32>
        %30 = arith.addi %29, %27 : vector<8x128xi32>
        %31 = vector.broadcast %25 : i32 to vector<8x128xi32>
        %32 = arith.cmpi slt, %30, %31 : vector<8x128xi32>
        %cst = arith.constant 0.000000e+00 : f32
        %33 = vector.broadcast %cst : f32 to vector<8x128xf32>
        %34 = arith.select %32, %17, %33 : vector<8x128xi1>, vector<8x128xf32>
        %c0_14 = arith.constant 0 : index
        %c0_15 = arith.constant 0 : index
        %35 = vector.load %arg7[%c0_14, %c0_15] : memref<8x128xf32, #tpu.memory_space<vmem>>, vector<8x128xf32>
        %36 = vector.shape_cast %34 : vector<8x128xf32> to vector<1x8x128xf32>
        %cst_16 = arith.constant dense<0.000000e+00> : vector<8x128xf32>
        %37 = vector.multi_reduction <add>, %36, %cst_16 [0] : vector<1x8x128xf32> to vector<8x128xf32>
        %38 = arith.addf %35, %37 : vector<8x128xf32>
        %c0_17 = arith.constant 0 : index
        %c0_18 = arith.constant 0 : index
        %39 = vector.load %arg7[%c0_17, %c0_18] : memref<8x128xf32, #tpu.memory_space<vmem>>, vector<8x128xf32>
        tpu.vector_store %arg7[%c0_17, %c0_18], %38 {strides = array<i32>} : memref<8x128xf32, #tpu.memory_space<vmem>>, vector<8x128xf32>,
      } else {
      }
      %c0_i32_12 = arith.constant 0 : i32
      %21 = arith.cmpi slt, %1, %c0_i32_12 : i32
      %22 = arith.extui %21 : i1 to i32
      %c0_i32_13 = arith.constant 0 : i32
      %23 = arith.cmpi ne, %22, %c0_i32_13 : i32
      scf.if %23 {
        %c0_14 = arith.constant 0 : index
        %c0_15 = arith.constant 0 : index
        %24 = vector.load %arg7[%c0_14, %c0_15] : memref<8x128xf32, #tpu.memory_space<vmem>>, vector<8x128xf32>
        %25 = vector.shape_cast %17 : vector<8x128xf32> to vector<1x8x128xf32>
        %cst = arith.constant dense<0.000000e+00> : vector<8x128xf32>
        %26 = vector.multi_reduction <add>, %25, %cst [0] : vector<1x8x128xf32> to vector<8x128xf32>
        %27 = arith.addf %24, %26 : vector<8x128xf32>
        %c0_16 = arith.constant 0 : index
        %c0_17 = arith.constant 0 : index
        %28 = vector.load %arg7[%c0_16, %c0_17] : memref<8x128xf32, #tpu.memory_space<vmem>>, vector<8x128xf32>
        tpu.vector_store %arg7[%c0_16, %c0_17], %27 {strides = array<i32>} : memref<8x128xf32, #tpu.memory_space<vmem>>, vector<8x128xf32>,
      } else {
      }
    } else {
    }
    %c1_i32_3 = arith.constant 1 : i32
    %8 = arith.cmpi slt, %1, %c1_i32_3 : i32
    %9 = arith.extui %8 : i1 to i32
    %c0_i32_4 = arith.constant 0 : i32
    %10 = arith.cmpi ne, %9, %c0_i32_4 : i32
    scf.if %10 {
      %c0 = arith.constant 0 : index
      %c0_7 = arith.constant 0 : index
      %14 = vector.load %arg4[%c0, %c0_7] : memref<8x128xf32, #tpu.memory_space<vmem>>, vector<8x128xf32>
      %c0_8 = arith.constant 0 : index
      %c0_9 = arith.constant 0 : index
      %15 = vector.load %arg5[%c0_8, %c0_9] : memref<8x128xf32, #tpu.memory_space<vmem>>, vector<8x128xf32>
      %cst = arith.constant 0.000000e+00 : f32
      %16 = vector.broadcast %cst : f32 to vector<8x128xf32>
      %17 = arith.maximumf %14, %16 : vector<8x128xf32>
      %18 = arith.mulf %14, %15 : vector<8x128xf32>
      %19 = arith.subf %17, %18 : vector<8x128xf32>
      %20 = math.absf %14 : vector<8x128xf32>
      %cst_10 = arith.constant 0.000000e+00 : f32
      %21 = vector.broadcast %cst_10 : f32 to vector<8x128xf32>
      %22 = arith.subf %21, %20 : vector<8x128xf32>
      %23 = math.exp %22 : vector<8x128xf32>
      %24 = math.log1p %23 : vector<8x128xf32>
      %25 = arith.addf %19, %24 : vector<8x128xf32>
      %c0_i32_11 = arith.constant 0 : i32
      %26 = arith.cmpi eq, %1, %c0_i32_11 : i32
      %27 = arith.extui %26 : i1 to i32
      %c0_i32_12 = arith.constant 0 : i32
      %28 = arith.cmpi ne, %27, %c0_i32_12 : i32
      scf.if %28 {
        %c1024_i32 = arith.constant 1024 : i32
        %32 = arith.muli %1, %c1024_i32 : i32
        %c2_i32 = arith.constant 2 : i32
        %33 = arith.subi %c2_i32, %32 : i32
        %34 = tpu.iota {dimensions = array<i32: 0>} : vector<8x128xi32>
        %35 = tpu.iota {dimensions = array<i32: 1>} : vector<8x128xi32>
        %c128_i32 = arith.constant 128 : i32
        %36 = vector.broadcast %c128_i32 : i32 to vector<8x128xi32>
        %37 = arith.muli %34, %36 : vector<8x128xi32>
        %38 = arith.addi %37, %35 : vector<8x128xi32>
        %39 = vector.broadcast %33 : i32 to vector<8x128xi32>
        %40 = arith.cmpi slt, %38, %39 : vector<8x128xi32>
        %cst_15 = arith.constant 0.000000e+00 : f32
        %41 = vector.broadcast %cst_15 : f32 to vector<8x128xf32>
        %42 = arith.select %40, %25, %41 : vector<8x128xi1>, vector<8x128xf32>
        %c0_16 = arith.constant 0 : index
        %c0_17 = arith.constant 0 : index
        %43 = vector.load %arg8[%c0_16, %c0_17] : memref<8x128xf32, #tpu.memory_space<vmem>>, vector<8x128xf32>
        %44 = vector.shape_cast %42 : vector<8x128xf32> to vector<1x8x128xf32>
        %cst_18 = arith.constant dense<0.000000e+00> : vector<8x128xf32>
        %45 = vector.multi_reduction <add>, %44, %cst_18 [0] : vector<1x8x128xf32> to vector<8x128xf32>
        %46 = arith.addf %43, %45 : vector<8x128xf32>
        %c0_19 = arith.constant 0 : index
        %c0_20 = arith.constant 0 : index
        %47 = vector.load %arg8[%c0_19, %c0_20] : memref<8x128xf32, #tpu.memory_space<vmem>>, vector<8x128xf32>
        tpu.vector_store %arg8[%c0_19, %c0_20], %46 {strides = array<i32>} : memref<8x128xf32, #tpu.memory_space<vmem>>, vector<8x128xf32>,
      } else {
      }
      %c0_i32_13 = arith.constant 0 : i32
      %29 = arith.cmpi slt, %1, %c0_i32_13 : i32
      %30 = arith.extui %29 : i1 to i32
      %c0_i32_14 = arith.constant 0 : i32
      %31 = arith.cmpi ne, %30, %c0_i32_14 : i32
      scf.if %31 {
        %c0_15 = arith.constant 0 : index
        %c0_16 = arith.constant 0 : index
        %32 = vector.load %arg8[%c0_15, %c0_16] : memref<8x128xf32, #tpu.memory_space<vmem>>, vector<8x128xf32>
        %33 = vector.shape_cast %25 : vector<8x128xf32> to vector<1x8x128xf32>
        %cst_17 = arith.constant dense<0.000000e+00> : vector<8x128xf32>
        %34 = vector.multi_reduction <add>, %33, %cst_17 [0] : vector<1x8x128xf32> to vector<8x128xf32>
        %35 = arith.addf %32, %34 : vector<8x128xf32>
        %c0_18 = arith.constant 0 : index
        %c0_19 = arith.constant 0 : index
        %36 = vector.load %arg8[%c0_18, %c0_19] : memref<8x128xf32, #tpu.memory_space<vmem>>, vector<8x128xf32>
        tpu.vector_store %arg8[%c0_18, %c0_19], %35 {strides = array<i32>} : memref<8x128xf32, #tpu.memory_space<vmem>>, vector<8x128xf32>,
      } else {
      }
    } else {
    }
    %c0_i32_5 = arith.constant 0 : i32
    %11 = arith.cmpi eq, %arg1, %c0_i32_5 : i32
    %12 = arith.extui %11 : i1 to i32
    %c0_i32_6 = arith.constant 0 : i32
    %13 = arith.cmpi ne, %12, %c0_i32_6 : i32
    scf.if %13 {
      %c0 = arith.constant 0 : index
      %c0_7 = arith.constant 0 : index
      %14 = vector.load %arg7[%c0, %c0_7] : memref<8x128xf32, #tpu.memory_space<vmem>>, vector<8x128xf32>
      %15 = vector.shape_cast %14 : vector<8x128xf32> to vector<1x8x128xf32>
      %cst = arith.constant dense<0.000000e+00> : vector<1xf32>
      %16 = vector.multi_reduction <add>, %15, %cst [1, 2] : vector<1x8x128xf32> to vector<1xf32>
      %17 = vector.shape_cast %16 : vector<1xf32> to vector<1x1x1xf32>
      %18 = vector.extract %17[0, 0, 0] : f32 from vector<1x1x1xf32>
      %c0_8 = arith.constant 0 : index
      %c0_9 = arith.constant 0 : index
      %19 = memref.load %arg6[%c0_8, %c0_9] : memref<1x2xf32, #tpu.memory_space<smem>>
      memref.store %18, %arg6[%c0_8, %c0_9] : memref<1x2xf32, #tpu.memory_space<smem>>
      %c0_10 = arith.constant 0 : index
      %c0_11 = arith.constant 0 : index
      %20 = vector.load %arg8[%c0_10, %c0_11] : memref<8x128xf32, #tpu.memory_space<vmem>>, vector<8x128xf32>
      %21 = vector.shape_cast %20 : vector<8x128xf32> to vector<1x8x128xf32>
      %cst_12 = arith.constant dense<0.000000e+00> : vector<1xf32>
      %22 = vector.multi_reduction <add>, %21, %cst_12 [1, 2] : vector<1x8x128xf32> to vector<1xf32>
      %23 = vector.shape_cast %22 : vector<1xf32> to vector<1x1x1xf32>
      %24 = vector.extract %23[0, 0, 0] : f32 from vector<1x1x1xf32>
      %c0_13 = arith.constant 0 : index
      %c1 = arith.constant 1 : index
      %25 = memref.load %arg6[%c0_13, %c1] : memref<1x2xf32, #tpu.memory_space<smem>>
      memref.store %24, %arg6[%c0_13, %c1] : memref<1x2xf32, #tpu.memory_space<smem>>
    } else {
    }
    return
  }
  func.func @transform_0(%arg0: i32, %arg1: i32) -> (i32, i32) {
    %c1_i32 = arith.constant 1 : i32
    %0 = arith.muli %arg0, %c1_i32 : i32
    %1 = arith.addi %0, %arg1 : i32
    %c0_i32 = arith.constant 0 : i32
    %2 = arith.minsi %1, %c0_i32 : i32
    %c0_i32_0 = arith.constant 0 : i32
    %c0_i32_1 = arith.constant 0 : i32
    return %2, %c0_i32_0 : i32, i32
  }
  func.func @transform_1(%arg0: i32, %arg1: i32) -> (i32, i32) {
    %c1_i32 = arith.constant 1 : i32
    %0 = arith.muli %arg0, %c1_i32 : i32
    %1 = arith.addi %0, %arg1 : i32
    %c0_i32 = arith.constant 0 : i32
    %2 = arith.minsi %1, %c0_i32 : i32
    %c0_i32_0 = arith.constant 0 : i32
    %c0_i32_1 = arith.constant 0 : i32
    return %2, %c0_i32_0 : i32, i32
  }
  func.func @transform_2(%arg0: i32, %arg1: i32) -> (i32, i32) {
    %c1_i32 = arith.constant 1 : i32
    %0 = arith.muli %arg0, %c1_i32 : i32
    %1 = arith.addi %0, %arg1 : i32
    %c0_i32 = arith.constant 0 : i32
    %2 = arith.minsi %1, %c0_i32 : i32
    %c0_i32_0 = arith.constant 0 : i32
    %c0_i32_1 = arith.constant 0 : i32
    return %2, %c0_i32_0 : i32, i32
  }
  func.func @transform_3(%arg0: i32, %arg1: i32) -> (i32, i32) {
    %c1_i32 = arith.constant 1 : i32
    %0 = arith.muli %arg0, %c1_i32 : i32
    %1 = arith.addi %0, %arg1 : i32
    %c0_i32 = arith.constant 0 : i32
    %2 = arith.minsi %1, %c0_i32 : i32
    %c0_i32_0 = arith.constant 0 : i32
    %c0_i32_1 = arith.constant 0 : i32
    return %2, %c0_i32_0 : i32, i32
  }
  func.func @transform_4(%arg0: i32, %arg1: i32) -> (i32, i32) {
    %c0_i32 = arith.constant 0 : i32
    %c0_i32_0 = arith.constant 0 : i32
    return %arg0, %c0_i32 : i32, i32
  }
}

</mosaic_0001>

<bundles_post_ra>
// kernel: tpu_custom_call.1
= control target key start
LH: loop header
LB: loop body
LE: loop exit
PB: predicated region body
PF: predicated region fallthrough
CT: control target
= control target key end

     0   :  { %9 = vsyncpa [#allocation5], 0  ;;  %s388_s0 = inlined_call_operand.hbm [shape: f32[8,128], index: 0, kind: input, shape index: {}]   ;;  %s389_s1 = inlined_call_operand.hbm [shape: f32[8,128], index: 1, kind: input, shape index: {}]   ;;  %s390_s2 = inlined_call_operand.hbm [shape: f32[8,128], index: 2, kind: input, shape index: {}]   ;;  %s391_s3 = inlined_call_operand.hbm [shape: f32[8,128], index: 3, kind: input, shape index: {}]   ;;  %s392_s4 = inlined_call_operand.hbm [shape: f32[1,2], index: 4, kind: output, shape index: {}]  }
   0x1   :  { %10 = vsyncpa [#allocation8], 0 }
   0x2   :  { %11 = vsyncpa [#allocation11], 0 }
   0x3   :  { %12 = vsyncpa [#allocation6], 0  ;;  %s343_s15 = smov [#allocation7]   ;;  %s344_s17 = smov [#allocation4]  }
   0x4   :  { %s39_s16 = sshll.u32 %s343_s15, 4  ;;  %s24_s18 = sshll.u32 %s344_s17, 4  ;;  %s40_s16 = int_to_ptr.vmem [resolvable:$true] %s39_s16  ;;  %s25_s18 = int_to_ptr.vmem [resolvable:$true] %s24_s18 }
   0x5   :  { %s255_s19 = scalar_lea.vmem %s40_s16, 128  ;;  %p260_p1 = scmp.lt.s32.totalorder %s40_s16, %s40_s16 }
   0x6   :  { %p256_p0 = scmp.ne.s32.totalorder %s40_s16, %s255_s19  ;;  %p261_p2 = scmp.lt.s32.totalorder %s255_s19, %s255_s19 }
   0x8   :  { %p262_p3 = por %p261_p2, %p260_p1 }
   0xa   :  { %p263_p4 = pnand %p262_p3, %p256_p0 }
   0xc   :  { %266 = shalt.err (!%p263_p4)
}
   0xd   :  { %42 = dma.hbm_to_vmem [thread:$0]  %s389_s1, 128, %s40_s16, [#allocation8]  }
   0xe   :  { %s275_s22 = scalar_lea.vmem %s25_s18, 128  ;;  %p280_p6 = scmp.lt.s32.totalorder %s25_s18, %s25_s18 }
   0xf   :  { %p276_p5 = scmp.ne.s32.totalorder %s25_s18, %s275_s22  ;;  %p281_p7 = scmp.lt.s32.totalorder %s275_s22, %s275_s22 }
  0x11   :  { %p282_p8 = por %p281_p7, %p280_p6 }
  0x13   :  { %p283_p9 = pnand %p282_p8, %p276_p5 }
  0x15   :  { %286 = shalt.err (!%p283_p9)
}
  0x16   :  { %27 = dma.hbm_to_vmem [thread:$0]  %s388_s0, 128, %s25_s18, [#allocation5]  }
  0x17   :  { %s345_s25 = smov [#allocation9]   ;;  %s346_s27 = smov [#allocation10]  }
  0x18   :  { %s54_s26 = sshll.u32 %s345_s25, 4  ;;  %s69_s28 = sshll.u32 %s346_s27, 4  ;;  %s55_s26 = int_to_ptr.vmem [resolvable:$true] %s54_s26  ;;  %s70_s28 = int_to_ptr.vmem [resolvable:$true] %s69_s28 }
  0x19   :  { %s295_s29 = scalar_lea.vmem %s55_s26, 128  ;;  %p300_p11 = scmp.lt.s32.totalorder %s55_s26, %s55_s26 }
  0x1a   :  { %p296_p10 = scmp.ne.s32.totalorder %s55_s26, %s295_s29  ;;  %p301_p12 = scmp.lt.s32.totalorder %s295_s29, %s295_s29 }
  0x1c   :  { %p302_p13 = por %p301_p12, %p300_p11 }
  0x1e   :  { %p303_p0 = pnand %p302_p13, %p296_p10 }
  0x20   :  { %306 = shalt.err (!%p303_p0)
}
  0x21   :  { %57 = dma.hbm_to_vmem [thread:$0]  %s390_s2, 128, %s55_s26, [#allocation8]  }
  0x22   :  { %s315_s5 = scalar_lea.vmem %s70_s28, 128  ;;  %p320_p2 = scmp.lt.s32.totalorder %s70_s28, %s70_s28 }
  0x23   :  { %p316_p1 = scmp.ne.s32.totalorder %s70_s28, %s315_s5  ;;  %p321_p3 = scmp.lt.s32.totalorder %s315_s5, %s315_s5 }
  0x25   :  { %p322_p4 = por %p321_p3, %p320_p2 }
  0x27   :  { %p323_p5 = pnand %p322_p4, %p316_p1 }
  0x29   :  { %326 = shalt.err (!%p323_p5)
}
  0x2a   :  { %72 = dma.hbm_to_vmem [thread:$0]  %s391_s3, 128, %s70_s28, [#allocation11]  }
  0x2b   :  { %335 = dma.done.wait [#allocation5], 128  }
  0x2c   :  { %336 = vsyncadd [#allocation5], 4294967168 }
  0x2d   :  { %337 = dma.done.wait [#allocation8], 256  }
  0x2e   :  { %338 = vsyncadd [#allocation8], 4294967040 }
  0x2f   :  { %339 = dma.done.wait [#allocation11], 128  }
  0x30   :  { %340 = vsyncadd [#allocation11], 4294967168  ;;  %v118_v0 = vlaneseq  ;;  %v108_v5 = vld [vmem:[#allocation4] sm:$0xff]  ;;  %v109_v6 = vld [vmem:[#allocation7] sm:$0xff]  ;;  %s347_s7 = smov [#allocation12]  }
  0x31   :  { %v139_v7 = vld [vmem:[#allocation9] sm:$0xff]  ;;  %v110_v8 = vsub.f32 %v108_v5, %v109_v6  ;;  %v140_v17 = vld [vmem:[#allocation10] sm:$0xff] }
  0x32   :  { %v119_v1 = vshrl.u32 %v118_v0, 7  ;;  %v121_v2 = vand.u32 127, %v118_v0  ;;  %v144_v9 = vand.u32 2147483647, %v139_v7  ;;  %v141_v19 = vmax.f32 %v139_v7, 0.0 }
  0x33   :  { %v111_v10 = vmul.f32 %v110_v8, %v110_v8  ;;  %v142_v20 = vmul.f32 %v140_v17, %v139_v7 }
  0x34   :  { %v122_v3 = vmul.u32 128, %v119_v1  ;;  %v145_v11 = vsub.f32 0.0, %v144_v9 }
  0x35   :  { %v143_v24 = vsub.f32 %v141_v19, %v142_v20 }
  0x36   :  { %v123_v4 = vadd.s32 %v122_v3, %v121_v2  ;;  %v146_v13 = vmul.f32 1.442695, %v145_v11 }
  0x38   :  { %vm125_vm0 = vcmp.lt.s32.totalorder %v123_v4, 16  ;;  %243 = vpow2.f32 %v146_v13  ;;  %vm170_vm2 = vcmp.lt.s32.totalorder %v123_v4, 2 }
  0x39   :  { %v126_v12 = vsel %vm125_vm0, %v111_v10, 0.0 }
  0x3a   :  { %187 = vadd.xlane.f32.xlu0 %v126_v12 }
  0x45   :  { %v244_v14 = vpop.eup %243 }
  0x46   :  { %v148_v15 = vadd.f32 1.0, %v244_v14  ;;  %v151_v16 = vmul.f32 -0.5, %v244_v14  ;;  %v154_v21 = vand.u32 2147483647, %v244_v14 }
  0x48   :  { %245 = vlog2.f32 %v148_v15  ;;  %v152_v18 = vadd.f32 1.0, %v151_v16  ;;  %vm155_vm1 = vcmp.lt.f32.partialorder %v154_v21, 0.0004427343 }
  0x4a   :  { %v153_v22 = vmul.f32 %v244_v14, %v152_v18 }
  0x55   :  { %v246_v23 = vpop.eup %245 }
  0x56   :  { %v150_v25 = vmul.f32 0.6931472, %v246_v23 }
  0x58   :  { %v156_v26 = vsel %vm155_vm1, %v153_v22, %v150_v25 }
  0x59   :  { %v157_v27 = vadd.f32 %v156_v26, %v143_v24 }
  0x5b   :  { %v171_v28 = vsel %vm170_vm2, %v157_v27, 0.0 }
  0x5c   :  { %199 = vadd.xlane.f32.xlu0 %v171_v28 }
  0xc3   :  { %v188_v29 = vpop.xlane.xlu0 %187 }
  0xc4   :  { %v189_v30 = vrot.slane %v188_v29, 4 }
  0xc6   :  { %v190_v31 = vadd.f32 %v189_v30, %v188_v29 }
  0xc8   :  { %v191_v32 = vrot.slane %v190_v31, 2 }
  0xca   :  { %v192_v33 = vadd.f32 %v191_v32, %v190_v31 }
  0xcc   :  { %v193_v34 = vrot.slane %v192_v33, 1 }
  0xce   :  { %v194_v35 = vadd.f32 %v193_v34, %v192_v33 }
  0xd0   :  { %234 = vpush %v194_v35 }
  0xe5   :  { %v200_v36 = vpop.xlane.xlu0 %199 }
  0xe6   :  { %v201_v37 = vrot.slane %v200_v36, 4 }
  0xe8   :  { %v202_v38 = vadd.f32 %v201_v37, %v200_v36 }
  0xea   :  { %v203_v39 = vrot.slane %v202_v38, 2 }
  0xec   :  { %v204_v40 = vadd.f32 %v203_v39, %v202_v38 }
  0xee   :  { %v205_v41 = vrot.slane %v204_v40, 1 }
  0xf0   :  { %v206_v42 = vadd.f32 %v205_v41, %v204_v40 }
  0xf2   :  { %236 = vpush %v206_v42 }
 0x101   :  { %s235_s2 = spop %234 }
 0x102   :  { %197 = sst [smem:[#allocation12]] %s235_s2 }
 0x123   :  { %s237_s3 = spop %236 }
 0x124   :  { %209 = sst [smem:[#allocation12 + $0x1]] %s237_s3 }
 0x125   :  { %217 = dma.smem_to_hbm %s347_s7, 16, %s392_s4, [#allocation6]  }
 0x126   :  { %341 = dma.done.wait [#allocation6], 16  }
 0x127   :  { %342 = vsyncadd [#allocation6], 4294967280 }
 0x128   :  { %221 = sfence }
 0x129   :  { %222 = vsyncpa [#allocation5], 1 }
 0x12a   :  { %223 = vsyncpa [#allocation8], 1 }
 0x12b   :  { %224 = vsyncpa [#allocation11], 1 }
 0x12c   :  { %225 = vsyncpa [#allocation6], 1 }

</bundles_post_ra>
